<compile_context>
chip_gen: v7x
topology: tpu7x:2x2x1
jax: 0.10.0
libtpu: 0.0.40
codegen_flags: <defaults>
</compile_context>

<pallas_src>
import jax
import jax.numpy as jnp
from jax.experimental import pallas as pl
from jax.experimental.pallas import tpu as pltpu

_MIB = 1024 * 1024


def _rce_kernel(logits_ref, rel_ref, out_ref, m_sc, l_sc):
    """Online LSE over class tiles; on the last class tile emit the row-tile
    partial sum  sum_i rel_i * lse_i  broadcast across a lane-dense block."""
    kc = pl.program_id(1)

    @pl.when(kc == 0)
    def _init():
        m_sc[...] = jnp.full(m_sc.shape, -jnp.inf, dtype=jnp.float32)
        l_sc[...] = jnp.zeros(l_sc.shape, dtype=jnp.float32)

    logits = logits_ref[...].astype(jnp.float32)               # (TN, TC)
    tile_max = jnp.max(logits, axis=-1, keepdims=True)         # (TN, 1)
    m_prev = m_sc[...]
    m_new = jnp.maximum(m_prev, tile_max)
    l_sc[...] = l_sc[...] * jnp.exp(m_prev - m_new) + jnp.sum(
        jnp.exp(logits - m_new), axis=-1, keepdims=True)
    m_sc[...] = m_new

    @pl.when(kc == pl.num_programs(1) - 1)
    def _finalize():
        lse = m_sc[...] + jnp.log(l_sc[...])                   # (TN, 1)
        partial = jnp.sum(lse * rel_ref[...])                  # scalar
        out_ref[...] = jnp.full(out_ref.shape, partial, dtype=jnp.float32)


def _vmem_limit_bytes():
    """Scoped-VMEM limit to request: physical capacity minus headroom,
    clamped (v5e/v6e: 128 MiB phys -> 96 MiB; v7x: 64 MiB phys -> 48 MiB)."""
    try:
        cap = int(pltpu.get_tpu_info().vmem_capacity_bytes)
    except Exception:
        cap = 64 * _MIB  # conservative fallback (v7x per-TensorCore VMEM)
    return max(32 * _MIB, min(cap - 16 * _MIB, 96 * _MIB))


def _choose_tile_c(c):
    # Keep the full class dim as the lane axis while it comfortably fits a
    # tile; above that, switch to 1024-lane class tiles + online LSE.
    return c if c <= 8192 else 1024


def _choose_tile_n(n, tile_c, itemsize, plan_budget_bytes):
    # Live VMEM per row of a tile (bytes):
    #   logits DMA block, double-buffered:              2 * tile_c * itemsize
    #   f32 in-kernel temporaries (upcast/exp/slack):  ~3 * 4 * tile_c
    #   rel block (pads to 128 lanes, f32, 2 buffers):  2 * 128 * 4
    #   m/l scratch (f32, 128-lane padded):             2 * 128 * 4
    per_row = tile_c * (2 * itemsize + 12) + 4 * 128 * 4
    t = int(plan_budget_bytes // max(1, per_row))
    t = max(8, min(t, 8192))
    t -= t % 8
    # Never pad tiny batches beyond the next multiple of 8.
    n8 = ((n + 7) // 8) * 8
    t = min(t, n8)
    # Keep grid_n >= 2 for non-tiny batches so the "parallel" row axis can
    # shard across both TensorCores on v7x (1 TC on v5e/v6e -> harmless).
    if n > 16:
        half = ((-(-n // 2)) + 7) // 8 * 8
        t = min(t, half)
    return max(8, t)


def reliable_cross_entropy_loss(y_pred, y_true, reliability, *,
                                tile_n=None, tile_c=None):
    """y_pred: (N, C) float logits (f32 or bf16); y_true: (N,) int class ids;
    reliability: any shape with N elements (flattened like .view(-1))."""
    n, c = y_pred.shape
    labels = y_true.astype(jnp.int32).reshape(n, 1)

    # reliability.view(-1) / reliability.max() -- matches the PyTorch formula
    # (a zero max produces inf/nan exactly like the reference would).
    rel = reliability.astype(jnp.float32).reshape(-1)
    rel = rel / jnp.max(rel)

    # Target logit per row, gathered on the XLA side; the weighted target term
    # is fully reduced here so the kernel never sees the labels.
    tgt = jnp.take_along_axis(y_pred.astype(jnp.float32), labels, axis=1)[:, 0]
    rel_tgt_sum = jnp.sum(rel * tgt)

    itemsize = y_pred.dtype.itemsize
    vmem_limit = _vmem_limit_bytes()
    plan_budget = int(vmem_limit * 0.6)   # safety margin over the estimate

    if tile_c is None:
        tile_c = _choose_tile_c(c)
    tile_c = min(tile_c, c)
    if tile_c < c:
        tile_c = max(128, tile_c - tile_c % 128)   # lane blocks: multiple of 128
    grid_c = -(-c // tile_c)
    c_pad = grid_c * tile_c

    if tile_n is None:
        tile_n = _choose_tile_n(n, tile_c, itemsize, plan_budget)
    assert tile_n % 8 == 0
    grid_n = -(-n // tile_n)
    n_pad = grid_n * tile_n

    rel2d = rel.reshape(n, 1)
    if n_pad != n:
        # Padded rows carry reliability 0 -> contribute nothing to the sum.
        y_pred = jnp.pad(y_pred, ((0, n_pad - n), (0, 0)))
        rel2d = jnp.pad(rel2d, ((0, n_pad - n), (0, 0)))
    if c_pad != c:
        # Padded classes are ~-inf -> exp() underflows to 0 in the online LSE.
        y_pred = jnp.pad(y_pred, ((0, 0), (0, c_pad - c)),
                         constant_values=-1e30)

    logits_bytes = n_pad * c_pad * itemsize
    cost = pl.CostEstimate(
        flops=5 * n_pad * c_pad,
        transcendentals=n_pad * c_pad,
        bytes_accessed=int(logits_bytes + n_pad * 4 + grid_n * 128 * 4),
    )

    # TODO(synk): for very small C (< 128 lanes) fold 128//C rows into the lane
    # axis for full-width VPU/EUP utilization; only matters once HBM-bound is
    # no longer the binding regime (v7x / bf16-on-v6e).
    partials = pl.pallas_call(
        _rce_kernel,
        out_shape=jax.ShapeDtypeStruct((grid_n, 1, 128), jnp.float32),
        grid_spec=pltpu.PrefetchScalarGridSpec(
            num_scalar_prefetch=0,
            grid=(grid_n, grid_c),
            in_specs=[
                pl.BlockSpec((tile_n, tile_c), lambda i, k: (i, k)),
                pl.BlockSpec((tile_n, 1), lambda i, k: (i, 0)),
            ],
            out_specs=pl.BlockSpec((1, 1, 128), lambda i, k: (i, 0, 0)),
            scratch_shapes=[
                pltpu.VMEM((tile_n, 1), jnp.float32),   # m carry (online LSE)
                pltpu.VMEM((tile_n, 1), jnp.float32),   # l carry (online LSE)
            ],
        ),
        compiler_params=pltpu.CompilerParams(
            dimension_semantics=("parallel", "arbitrary"),
            vmem_limit_bytes=vmem_limit,
        ),
        cost_estimate=cost,
    )(y_pred, rel2d)

    # Tiny final reduction + mean over the TRUE batch size on the XLA side:
    # mean(rel * (lse - tgt)) = (sum(rel*lse) - sum(rel*tgt)) / N
    return (jnp.sum(partials[:, 0, 0]) - rel_tgt_sum) / n


def _reference(y_pred, y_true, reliability):
    logp = jax.nn.log_softmax(y_pred.astype(jnp.float32), axis=-1)
    loss = -jnp.take_along_axis(
        logp, y_true.reshape(-1, 1).astype(jnp.int32), axis=-1)[:, 0]
    rel = reliability.astype(jnp.float32).reshape(-1)
    rel = rel / jnp.max(rel)
    return jnp.mean(loss * rel)


if __name__ == "__main__":
    key = jax.random.PRNGKey(0)
    k1, k2, k3 = jax.random.split(key, 3)

    # Case 1: small single-tile (batch=8, classes=32), auto tiling.
    N, C = 8, 32
    y_pred = jax.random.normal(k1, (N, C), dtype=jnp.float32)
    y_true = jax.random.randint(k2, (N,), 0, C, dtype=jnp.int32)
    reliability = jax.random.uniform(k3, (N,), dtype=jnp.float32,
                                     minval=0.1, maxval=1.0)
    out = jax.block_until_ready(
        reliable_cross_entropy_loss(y_pred, y_true, reliability))
    ref = _reference(y_pred, y_true, reliability)
    assert jnp.allclose(out, ref, atol=1e-5, rtol=1e-5), (out, ref)

    # Case 2: multi-row-tile grid with remainder-row padding (5 row tiles).
    k4, k5, k6 = jax.random.split(jax.random.PRNGKey(1), 3)
    N2, C2 = 300, 32
    y_pred2 = jax.random.normal(k4, (N2, C2), dtype=jnp.float32)
    y_true2 = jax.random.randint(k5, (N2,), 0, C2, dtype=jnp.int32)
    rel2 = jax.random.uniform(k6, (N2,), dtype=jnp.float32,
                              minval=0.1, maxval=1.0)
    out2 = jax.block_until_ready(
        reliable_cross_entropy_loss(y_pred2, y_true2, rel2, tile_n=64))
    ref2 = _reference(y_pred2, y_true2, rel2)
    assert jnp.allclose(out2, ref2, atol=1e-5, rtol=1e-5), (out2, ref2)

    # Case 3: bf16 logits (DMA bf16, f32 compute), auto tiling (grid_n = 2).
    out3 = jax.block_until_ready(
        reliable_cross_entropy_loss(y_pred2.astype(jnp.bfloat16),
                                    y_true2, rel2))
    ref3 = _reference(y_pred2.astype(jnp.bfloat16), y_true2, rel2)
    assert jnp.allclose(out3, ref3, atol=1e-4, rtol=1e-4), (out3, ref3)

    # Case 4: class-tiled online-LSE path (C=320, tile_c=128 -> 3 class tiles
    # with -1e30 class padding on the last tile).
    k7, k8, k9 = jax.random.split(jax.random.PRNGKey(2), 3)
    N4, C4 = 64, 320
    y_pred4 = jax.random.normal(k7, (N4, C4), dtype=jnp.float32)
    y_true4 = jax.random.randint(k8, (N4,), 0, C4, dtype=jnp.int32)
    rel4 = jax.random.uniform(k9, (N4,), dtype=jnp.float32,
                              minval=0.1, maxval=1.0)
    out4 = jax.block_until_ready(
        reliable_cross_entropy_loss(y_pred4, y_true4, rel4, tile_c=128))
    ref4 = _reference(y_pred4, y_true4, rel4)
    assert jnp.allclose(out4, ref4, atol=1e-5, rtol=1e-5), (out4, ref4)

    print("KERNEL_OK")
</pallas_src>

<mosaic_0001>
module attributes {stable_mosaic.version = 11 : i64} {
  func.func @_rce_kernel(%arg0: i32, %arg1: i32, %arg2: memref<8x32xf32, #tpu.memory_space<vmem>>, %arg3: memref<8x1xf32, #tpu.memory_space<vmem>>, %arg4: memref<1x1x128xf32, #tpu.memory_space<vmem>>, %arg5: memref<8x1xf32, #tpu.memory_space<vmem>>, %arg6: memref<8x1xf32, #tpu.memory_space<vmem>>) attributes {dimension_semantics = [#tpu.dimension_semantics<parallel>, #tpu.dimension_semantics<arbitrary>], iteration_bounds = array<i64: 1, 1>, scalar_prefetch = 0 : i64, scratch_operands = 2 : i64, tpu.core_type = #tpu.core_type<tc>, window_params = [{transform_indices = @transform_0, window_bounds = array<i64: 8, 32>}, {transform_indices = @transform_1, window_bounds = array<i64: 8, 1>}, {transform_indices = @transform_2, window_bounds = array<i64: 1, 1, 128>}]} {
    %c0_i32 = arith.constant 0 : i32
    %0 = arith.cmpi eq, %arg1, %c0_i32 : i32
    %1 = arith.extui %0 : i1 to i32
    %c0_i32_0 = arith.constant 0 : i32
    %2 = arith.cmpi ne, %1, %c0_i32_0 : i32
    scf.if %2 {
      %cst_13 = arith.constant 0xFF800000 : f32
      %23 = vector.broadcast %cst_13 : f32 to vector<8x1xf32>
      %c0_14 = arith.constant 0 : index
      %c0_15 = arith.constant 0 : index
      %24 = vector.load %arg5[%c0_14, %c0_15] : memref<8x1xf32, #tpu.memory_space<vmem>>, vector<8x1xf32>
      tpu.vector_store %arg5[%c0_14, %c0_15], %23 {strides = array<i32>} : memref<8x1xf32, #tpu.memory_space<vmem>>, vector<8x1xf32>,
      %cst_16 = arith.constant 0.000000e+00 : f32
      %25 = vector.broadcast %cst_16 : f32 to vector<8x1xf32>
      %c0_17 = arith.constant 0 : index
      %c0_18 = arith.constant 0 : index
      %26 = vector.load %arg6[%c0_17, %c0_18] : memref<8x1xf32, #tpu.memory_space<vmem>>, vector<8x1xf32>
      tpu.vector_store %arg6[%c0_17, %c0_18], %25 {strides = array<i32>} : memref<8x1xf32, #tpu.memory_space<vmem>>, vector<8x1xf32>,
    } else {
    }
    %c0 = arith.constant 0 : index
    %c0_1 = arith.constant 0 : index
    %3 = vector.load %arg2[%c0, %c0_1] : memref<8x32xf32, #tpu.memory_space<vmem>>, vector<8x32xf32>
    %cst = arith.constant dense<0xFF800000> : vector<8xf32>
    %4 = vector.multi_reduction <maximumf>, %3, %cst [1] : vector<8x32xf32> to vector<8xf32>
    %5 = vector.shape_cast %4 : vector<8xf32> to vector<8x1xf32>
    %c0_2 = arith.constant 0 : index
    %c0_3 = arith.constant 0 : index
    %6 = vector.load %arg5[%c0_2, %c0_3] : memref<8x1xf32, #tpu.memory_space<vmem>>, vector<8x1xf32>
    %7 = arith.maximumf %6, %5 : vector<8x1xf32>
    %c0_4 = arith.constant 0 : index
    %c0_5 = arith.constant 0 : index
    %8 = vector.load %arg6[%c0_4, %c0_5] : memref<8x1xf32, #tpu.memory_space<vmem>>, vector<8x1xf32>
    %9 = arith.subf %6, %7 : vector<8x1xf32>
    %10 = math.exp %9 : vector<8x1xf32>
    %11 = arith.mulf %8, %10 : vector<8x1xf32>
    %12 = vector.broadcast %7 : vector<8x1xf32> to vector<8x32xf32>
    %13 = arith.subf %3, %12 : vector<8x32xf32>
    %14 = math.exp %13 : vector<8x32xf32>
    %cst_6 = arith.constant dense<0.000000e+00> : vector<8xf32>
    %15 = vector.multi_reduction <add>, %14, %cst_6 [1] : vector<8x32xf32> to vector<8xf32>
    %16 = vector.shape_cast %15 : vector<8xf32> to vector<8x1xf32>
    %17 = arith.addf %11, %16 : vector<8x1xf32>
    %c0_7 = arith.constant 0 : index
    %c0_8 = arith.constant 0 : index
    %18 = vector.load %arg6[%c0_7, %c0_8] : memref<8x1xf32, #tpu.memory_space<vmem>>, vector<8x1xf32>
    tpu.vector_store %arg6[%c0_7, %c0_8], %17 {strides = array<i32>} : memref<8x1xf32, #tpu.memory_space<vmem>>, vector<8x1xf32>,
    %c0_9 = arith.constant 0 : index
    %c0_10 = arith.constant 0 : index
    %19 = vector.load %arg5[%c0_9, %c0_10] : memref<8x1xf32, #tpu.memory_space<vmem>>, vector<8x1xf32>
    tpu.vector_store %arg5[%c0_9, %c0_10], %7 {strides = array<i32>} : memref<8x1xf32, #tpu.memory_space<vmem>>, vector<8x1xf32>,
    %c0_i32_11 = arith.constant 0 : i32
    %20 = arith.cmpi eq, %arg1, %c0_i32_11 : i32
    %21 = arith.extui %20 : i1 to i32
    %c0_i32_12 = arith.constant 0 : i32
    %22 = arith.cmpi ne, %21, %c0_i32_12 : i32
    scf.if %22 {
      %c0_13 = arith.constant 0 : index
      %c0_14 = arith.constant 0 : index
      %23 = vector.load %arg5[%c0_13, %c0_14] : memref<8x1xf32, #tpu.memory_space<vmem>>, vector<8x1xf32>
      %c0_15 = arith.constant 0 : index
      %c0_16 = arith.constant 0 : index
      %24 = vector.load %arg6[%c0_15, %c0_16] : memref<8x1xf32, #tpu.memory_space<vmem>>, vector<8x1xf32>
      %25 = math.log %24 : vector<8x1xf32>
      %26 = arith.addf %23, %25 : vector<8x1xf32>
      %c0_17 = arith.constant 0 : index
      %c0_18 = arith.constant 0 : index
      %27 = vector.load %arg3[%c0_17, %c0_18] : memref<8x1xf32, #tpu.memory_space<vmem>>, vector<8x1xf32>
      %28 = arith.mulf %26, %27 : vector<8x1xf32>
      %29 = vector.shape_cast %28 : vector<8x1xf32> to vector<1x8x1xf32>
      %cst_19 = arith.constant dense<0.000000e+00> : vector<1xf32>
      %30 = vector.multi_reduction <add>, %29, %cst_19 [1, 2] : vector<1x8x1xf32> to vector<1xf32>
      %31 = vector.shape_cast %30 : vector<1xf32> to vector<1x1x1xf32>
      %32 = vector.extract %31[0, 0, 0] : f32 from vector<1x1x1xf32>
      %33 = vector.broadcast %32 : f32 to vector<1x1x128xf32>
      %c0_20 = arith.constant 0 : index
      %c0_21 = arith.constant 0 : index
      %c0_22 = arith.constant 0 : index
      %34 = vector.load %arg4[%c0_20, %c0_21, %c0_22] : memref<1x1x128xf32, #tpu.memory_space<vmem>>, vector<1x1x128xf32>
      tpu.vector_store %arg4[%c0_20, %c0_21, %c0_22], %33 {strides = array<i32>} : memref<1x1x128xf32, #tpu.memory_space<vmem>>, vector<1x1x128xf32>,
    } else {
    }
    return
  }
  func.func @transform_0(%arg0: i32, %arg1: i32) -> (i32, i32) {
    %c0_i32 = arith.constant 0 : i32
    return %arg0, %arg1 : i32, i32
  }
  func.func @transform_1(%arg0: i32, %arg1: i32) -> (i32, i32) {
    %c0_i32 = arith.constant 0 : i32
    %c0_i32_0 = arith.constant 0 : i32
    return %arg0, %c0_i32 : i32, i32
  }
  func.func @transform_2(%arg0: i32, %arg1: i32) -> (i32, i32, i32) {
    %c0_i32 = arith.constant 0 : i32
    %c0_i32_0 = arith.constant 0 : i32
    %c0_i32_1 = arith.constant 0 : i32
    return %arg0, %c0_i32, %c0_i32_0 : i32, i32, i32
  }
}

</mosaic_0001>

<bundles_post_ra>
// kernel: tpu_custom_call.1
= control target key start
LH: loop header
LB: loop body
LE: loop exit
PB: predicated region body
PF: predicated region fallthrough
CT: control target
= control target key end

     0   :  { %vm20_vm0 = vcmask 261120   ;;  %s163_s0 = inlined_call_operand.vmem [shape: f32[8,32], index: 0, kind: input, shape index: {}]   ;;  %s164_s1 = inlined_call_operand.vmem [shape: f32[8,1], index: 1, kind: input, shape index: {}]   ;;  %s165_s2 = inlined_call_operand.hbm [shape: f32[1,1,128], index: 2, kind: output, shape index: {}]  }
   0x1   :  { %v19_v0 = vld [vmem:[%s163_s0] sm:$0xff] }
   0x2   :  { %7 = vsyncpa [#allocation5], 0  ;;  %v21_v1 = vsel %vm20_vm0, %v19_v0, -inf  ;;  %vm16_vm1 = vcmask 7168   ;;  %v119_v2 = vmov -inf   ;;  %v120_v3 = vmov 0  }
   0x3   :  { %22 = vmax.xlane.f32.xlu0 %v21_v1  ;;  %17 = vst.msk [vmem:[#allocation2] sm:$0xff] %vm16_vm1, %v119_v2  ;;  %v121_v4 = vmov 0.0   ;;  %v54_v24 = vld [vmem:[%s164_s1] sm:$0xff]  ;;  %s122_s12 = smov [#allocation4]  }
   0x4   :  { %88 = vset.pattern.permute.xlu0 %v120_v3  ;;  %18 = vst.msk [vmem:[#allocation3] sm:$0xff] %vm16_vm1, %v121_v4  ;;  %s74_s13 = sshll.u32 %s122_s12, 4  ;;  %s75_s13 = int_to_ptr.vmem [resolvable:$true] %s74_s13 }
   0x5   :  { %s95_s1 = scalar_lea.vmem %s75_s13, 16  ;;  %s99_s15 = scalar_lea.vmem %s75_s13, 32 }
   0x6   :  { %p96_p0 = scmp.ne.s32.totalorder %s75_s13, %s95_s1  ;;  %p100_p1 = scmp.lt.s32.totalorder %s75_s13, %s75_s13 }
   0x7   :  { %p101_p2 = scmp.lt.s32.totalorder %s99_s15, %s95_s1 }
   0x9   :  { %p102_p3 = por %p101_p2, %p100_p1 }
   0xa   :  { %v24_v5 = vld [vmem:[#allocation2] sm:$0xff] }
   0xb   :  { %v26_v16 = vld [vmem:[#allocation3] sm:$0xff]  ;;  %p103_p4 = pnand %p102_p3, %p96_p0 }
  0x90   :  { %v23_v6 = vpop.xlane.xlu0 %22 }
  0x91   :  { %v25_v7 = vmax.f32 %v24_v5, %v23_v6 }
  0x93   :  { %v27_v8 = vsub.f32 %v24_v5, %v25_v7  ;;  %45 = vst.msk [vmem:[#allocation2] sm:$0xff] %vm16_vm1, %v25_v7  ;;  %33 = vperm.xlu0 %88, %v25_v7  }
  0x95   :  { %v28_v14 = vmul.f32 1.442695, %v27_v8 }
  0x9a   :  { %v49_v23 = vld [vmem:[#allocation2] sm:$0xff] }
 0x112   :  { %v34_v9 = vpop.permute.xlu0 %33 }
 0x113   :  { %v36_v10 = vsub.f32 %v19_v0, %v34_v9 }
 0x115   :  { %v37_v11 = vmul.f32 1.442695, %v36_v10 }
 0x117   :  { %89 = vpow2.f32 %v37_v11 }
 0x118   :  { %91 = vpow2.f32 %v28_v14 }
 0x121   :  { %v90_v12 = vpop.eup %89 }
 0x122   :  { %v39_v13 = vsel %vm20_vm0, %v90_v12, 0.0  ;;  %v92_v15 = vpop.eup %91 }
 0x123   :  { %40 = vadd.xlane.f32.xlu1 %v39_v13  ;;  %v30_v17 = vmul.f32 %v92_v15, %v26_v16 }
 0x1b0   :  { %v41_v18 = vpop.xlane.xlu1 %40 }
 0x1b1   :  { %v42_v19 = vadd.f32 %v41_v18, %v30_v17 }
 0x1b3   :  { %44 = vst.msk [vmem:[#allocation3] sm:$0xff] %vm16_vm1, %v42_v19 }
 0x1ba   :  { %v50_v20 = vld [vmem:[#allocation3] sm:$0xff] }
 0x1bb   :  { %93 = vlog2.f32 %v50_v20 }
 0x1c5   :  { %v94_v21 = vpop.eup %93 }
 0x1c6   :  { %v52_v22 = vmul.f32 0.6931472, %v94_v21 }
 0x1c8   :  { %v53_v25 = vadd.f32 %v52_v22, %v49_v23 }
 0x1ca   :  { %v55_v26 = vmul.f32 %v54_v24, %v53_v25 }
 0x1cc   :  { %v56_v27 = vsel %vm16_vm1, %v55_v26, 0.0 }
 0x1cd   :  { %57 = vadd.xlane.f32.xlu1 %v56_v27 }
 0x25a   :  { %v58_v28 = vpop.xlane.xlu1 %57 }
 0x25b   :  { %v59_v29 = vrot.slane %v58_v28, 4 }
 0x25d   :  { %v60_v30 = vadd.f32 %v59_v29, %v58_v28 }
 0x25f   :  { %v61_v31 = vrot.slane %v60_v30, 2 }
 0x261   :  { %v62_v32 = vadd.f32 %v61_v31, %v60_v30 }
 0x263   :  { %v63_v33 = vrot.slane %v62_v32, 1 }
 0x265   :  { %v64_v34 = vadd.f32 %v63_v33, %v62_v32 }
 0x267   :  { %82 = vpush %v64_v34 }
 0x298   :  { %s83_s14 = spop %82 }
 0x299   :  { %v66_v35 = vstv %s83_s14 }
 0x29a   :  { %67 = vst [vmem:[#allocation4] sm:$0x1] %v66_v35 }
 0x29b   :  { %106 = shalt.err (!%p103_p4)
}
 0x29c   :  { %s107_s18 = scalar_lea.hbm %s165_s2, 16 }
 0x29d   :  { %p108_p5 = scmp.ne.s32.totalorder %s165_s2, %s107_s18  ;;  %p111_p6 = scmp.lt.u32.totalorder %s107_s18, %s165_s2 }
 0x29f   :  { %p113_p7 = pnand %p111_p6, %p108_p5 }
 0x2a1   :  { %116 = shalt.err (!%p113_p7)
}
 0x2a2   :  { %77 = dma.vmem_to_hbm [thread:$0]  %s75_s13, 16, %s165_s2, [#allocation5]  }
 0x2a3   :  { %117 = dma.done.wait [#allocation5], 16  }
 0x2a4   :  { %118 = vsyncadd [#allocation5], 4294967280 }
 0x2a5   :  { %81 = vsyncpa [#allocation5], 1 }

</bundles_post_ra>
